<compile_context>
chip_gen: v7x
topology: tpu7x:2x2x1
jax: 0.10.0
libtpu: 0.0.40
codegen_flags: <defaults>
</compile_context>

<pallas_src>
import functools

import jax
import jax.numpy as jnp
from jax.experimental import pallas as pl
from jax.experimental.pallas import tpu as pltpu

LANE = 128  # TPU lane width


def _round_up(x, m):
    return ((x + m - 1) // m) * m


# ----------------------------------------------------------------------------
# Fused MLP kernel: all layers in one body, weights resident in VMEM.
# ----------------------------------------------------------------------------
def _fused_mlp_kernel(*refs, n_layers, compute_dtype):
    # refs = (x_ref, w0, b0, w1, b1, ..., w_{n-1}, b_{n-1}, o_ref)
    x_ref = refs[0]
    o_ref = refs[-1]
    wb = refs[1:-1]

    h = x_ref[...]                                   # (TB, D0p) f32
    for i in range(n_layers):
        w = wb[2 * i][...]                           # (Dip, Dop) compute_dtype
        b = wb[2 * i + 1][...]                       # (1, Dop)   f32
        h = jnp.dot(h.astype(compute_dtype), w,
                    preferred_element_type=jnp.float32) + b
        if i < n_layers - 1:
            # LeakyReLU(negative_slope=0.2)
            h = jnp.maximum(h, 0.2 * h)
        else:
            # Numerically stable sigmoid (exp -> EUP slot).
            h = jnp.where(h >= 0.0,
                          1.0 / (1.0 + jnp.exp(-h)),
                          jnp.exp(h) / (1.0 + jnp.exp(h)))
    o_ref[...] = h.astype(o_ref.dtype)


# ----------------------------------------------------------------------------
# Wrapper: pad to lane-dense shapes, tile the batch, call the fused kernel.
# ----------------------------------------------------------------------------
def discriminator_forward(params, x, *, compute_dtype=jnp.bfloat16, tb_max=256):
    """act_out(... act_in(x @ W0 + b0) ... @ Wn + bn) as a single Pallas kernel.

    params: list of (W (in,out) f32, b (out,) f32);  x: (B, layers_dim[0]) f32.
    """
    B, Din = x.shape
    n_layers = len(params)
    dims = [Din] + [w.shape[1] for (w, _) in params]
    dims_pad = [_round_up(d, LANE) for d in dims]

    # --- batch tiling (budgeted well under v7x's 64 MiB VMEM) -----------------
    if B <= tb_max:
        TB = _round_up(B, 8)
        Bp = TB
    else:
        TB = tb_max
        Bp = _round_up(B, TB)
    n_tiles = Bp // TB

    # --- zero-pad input / weights / biases to lane-dense shapes ---------------
    xp = jnp.zeros((Bp, dims_pad[0]), jnp.float32).at[:B, :Din].set(x)

    flat_inputs = [xp]
    in_specs = [pl.BlockSpec((TB, dims_pad[0]), lambda i: (i, 0))]
    for li, (w, b) in enumerate(params):
        din_p, dout_p = dims_pad[li], dims_pad[li + 1]
        wp = jnp.zeros((din_p, dout_p), jnp.float32).at[: w.shape[0], : w.shape[1]].set(w)
        wp = wp.astype(compute_dtype)                       # MXU operand dtype
        bp = jnp.zeros((1, dout_p), jnp.float32).at[0, : b.shape[0]].set(b)
        flat_inputs += [wp, bp]
        in_specs += [
            pl.BlockSpec((din_p, dout_p), lambda i: (0, 0)),   # grid-invariant
            pl.BlockSpec((1, dout_p), lambda i: (0, 0)),       # -> stays resident
        ]

    kernel = functools.partial(_fused_mlp_kernel,
                               n_layers=n_layers, compute_dtype=compute_dtype)

    out_pad = pl.pallas_call(
        kernel,
        out_shape=jax.ShapeDtypeStruct((Bp, dims_pad[-1]), jnp.float32),
        grid=(n_tiles,),
        in_specs=in_specs,
        out_specs=pl.BlockSpec((TB, dims_pad[-1]), lambda i: (i, 0)),
        compiler_params=pltpu.CompilerParams(dimension_semantics=("parallel",)),
    )(*flat_inputs)

    return out_pad[:B, : dims[-1]]


# ----------------------------------------------------------------------------
# Parameter init (mirrors nn.Linear init; weights stored pre-transposed (in,out)).
# ----------------------------------------------------------------------------
def init_discriminator_params(key, layers_dim):
    params = []
    for i in range(1, len(layers_dim)):
        fan_in, fan_out = layers_dim[i - 1], layers_dim[i]
        key, kw, kb = jax.random.split(key, 3)
        bound = 1.0 / jnp.sqrt(fan_in)
        w = jax.random.uniform(kw, (fan_in, fan_out), jnp.float32, -bound, bound)
        b = jax.random.uniform(kb, (fan_out,), jnp.float32, -bound, bound)
        params.append((w, b))
    return params


# ----------------------------------------------------------------------------
# Pure-JAX reference.
# ----------------------------------------------------------------------------
def discriminator_forward_ref(params, x):
    n = len(params)
    for i, (w, b) in enumerate(params):
        y = x @ w + b
        x = jnp.where(y >= 0, y, 0.2 * y) if i < n - 1 else jax.nn.sigmoid(y)
    return x


if __name__ == "__main__":
    layers_dim = [32, 64, 64, 1]
    batch = 8

    key = jax.random.PRNGKey(0)
    key, kx = jax.random.split(key)
    x = jax.random.normal(kx, (batch, layers_dim[0]), dtype=jnp.float32)
    params = init_discriminator_params(key, layers_dim)

    ref = discriminator_forward_ref(params, x)

    # f32 compute: tight check.
    out_f32 = jax.block_until_ready(
        discriminator_forward(params, x, compute_dtype=jnp.float32))
    assert out_f32.shape == (batch, layers_dim[-1])
    assert jnp.allclose(out_f32, ref, atol=1e-5, rtol=1e-5), "f32 mismatch vs reference"

    # bf16 MXU operands (default fast path): relaxed check.
    out_bf16 = jax.block_until_ready(
        discriminator_forward(params, x, compute_dtype=jnp.bfloat16))
    assert jnp.allclose(out_bf16, ref, atol=3e-2, rtol=3e-2), "bf16 mismatch vs reference"

    # Multi-tile batch path (grid > 1, batch not a multiple of the tile).
    key, kx2 = jax.random.split(key)
    x_big = jax.random.normal(kx2, (300, layers_dim[0]), dtype=jnp.float32)
    out_big = jax.block_until_ready(
        discriminator_forward(params, x_big, compute_dtype=jnp.float32, tb_max=128))
    ref_big = discriminator_forward_ref(params, x_big)
    assert out_big.shape == (300, layers_dim[-1])
    assert jnp.allclose(out_big, ref_big, atol=1e-5, rtol=1e-5), "tiled mismatch vs reference"

    print("KERNEL_OK")
</pallas_src>

<mosaic_0001>
module attributes {stable_mosaic.version = 11 : i64} {
  func.func @_fused_mlp_kernel(%arg0: i32, %arg1: memref<8x128xf32, #tpu.memory_space<vmem>>, %arg2: memref<128x128xf32, #tpu.memory_space<vmem>>, %arg3: memref<1x128xf32, #tpu.memory_space<vmem>>, %arg4: memref<128x128xf32, #tpu.memory_space<vmem>>, %arg5: memref<1x128xf32, #tpu.memory_space<vmem>>, %arg6: memref<128x128xf32, #tpu.memory_space<vmem>>, %arg7: memref<1x128xf32, #tpu.memory_space<vmem>>, %arg8: memref<8x128xf32, #tpu.memory_space<vmem>>) attributes {dimension_semantics = [#tpu.dimension_semantics<parallel>], iteration_bounds = array<i64: 1>, scalar_prefetch = 0 : i64, scratch_operands = 0 : i64, tpu.core_type = #tpu.core_type<tc>, window_params = [{transform_indices = @transform_0, window_bounds = array<i64: 8, 128>}, {pipeline_mode = #tpu.pipeline_mode<synchronous>, transform_indices = @transform_1, window_bounds = array<i64: 128, 128>}, {pipeline_mode = #tpu.pipeline_mode<synchronous>, transform_indices = @transform_2, window_bounds = array<i64: 1, 128>}, {pipeline_mode = #tpu.pipeline_mode<synchronous>, transform_indices = @transform_3, window_bounds = array<i64: 128, 128>}, {pipeline_mode = #tpu.pipeline_mode<synchronous>, transform_indices = @transform_4, window_bounds = array<i64: 1, 128>}, {pipeline_mode = #tpu.pipeline_mode<synchronous>, transform_indices = @transform_5, window_bounds = array<i64: 128, 128>}, {pipeline_mode = #tpu.pipeline_mode<synchronous>, transform_indices = @transform_6, window_bounds = array<i64: 1, 128>}, {transform_indices = @transform_7, window_bounds = array<i64: 8, 128>}]} {
    %c0 = arith.constant 0 : index
    %c0_0 = arith.constant 0 : index
    %0 = vector.load %arg1[%c0, %c0_0] : memref<8x128xf32, #tpu.memory_space<vmem>>, vector<8x128xf32>
    %c0_1 = arith.constant 0 : index
    %c0_2 = arith.constant 0 : index
    %1 = vector.load %arg2[%c0_1, %c0_2] : memref<128x128xf32, #tpu.memory_space<vmem>>, vector<128x128xf32>
    %c0_3 = arith.constant 0 : index
    %c0_4 = arith.constant 0 : index
    %2 = vector.load %arg3[%c0_3, %c0_4] : memref<1x128xf32, #tpu.memory_space<vmem>>, vector<1x128xf32>
    %cst = arith.constant dense<0.000000e+00> : vector<8x128xf32>
    %3 = tpu.matmul %0, %1, %cst {dimension_numbers = #tpu.dot_dimension_numbers<[1], [0], [0], [1], [0, 0, 1, 1], [], []>} : vector<8x128xf32>, vector<128x128xf32>, vector<8x128xf32> -> vector<8x128xf32>
    %4 = vector.broadcast %2 : vector<1x128xf32> to vector<8x128xf32>
    %5 = arith.addf %3, %4 : vector<8x128xf32>
    %cst_5 = arith.constant 2.000000e-01 : f32
    %6 = vector.broadcast %cst_5 : f32 to vector<8x128xf32>
    %7 = arith.mulf %6, %5 : vector<8x128xf32>
    %8 = arith.maximumf %5, %7 : vector<8x128xf32>
    %c0_6 = arith.constant 0 : index
    %c0_7 = arith.constant 0 : index
    %9 = vector.load %arg4[%c0_6, %c0_7] : memref<128x128xf32, #tpu.memory_space<vmem>>, vector<128x128xf32>
    %c0_8 = arith.constant 0 : index
    %c0_9 = arith.constant 0 : index
    %10 = vector.load %arg5[%c0_8, %c0_9] : memref<1x128xf32, #tpu.memory_space<vmem>>, vector<1x128xf32>
    %cst_10 = arith.constant dense<0.000000e+00> : vector<8x128xf32>
    %11 = tpu.matmul %8, %9, %cst_10 {dimension_numbers = #tpu.dot_dimension_numbers<[1], [0], [0], [1], [0, 0, 1, 1], [], []>} : vector<8x128xf32>, vector<128x128xf32>, vector<8x128xf32> -> vector<8x128xf32>
    %12 = vector.broadcast %10 : vector<1x128xf32> to vector<8x128xf32>
    %13 = arith.addf %11, %12 : vector<8x128xf32>
    %cst_11 = arith.constant 2.000000e-01 : f32
    %14 = vector.broadcast %cst_11 : f32 to vector<8x128xf32>
    %15 = arith.mulf %14, %13 : vector<8x128xf32>
    %16 = arith.maximumf %13, %15 : vector<8x128xf32>
    %c0_12 = arith.constant 0 : index
    %c0_13 = arith.constant 0 : index
    %17 = vector.load %arg6[%c0_12, %c0_13] : memref<128x128xf32, #tpu.memory_space<vmem>>, vector<128x128xf32>
    %c0_14 = arith.constant 0 : index
    %c0_15 = arith.constant 0 : index
    %18 = vector.load %arg7[%c0_14, %c0_15] : memref<1x128xf32, #tpu.memory_space<vmem>>, vector<1x128xf32>
    %cst_16 = arith.constant dense<0.000000e+00> : vector<8x128xf32>
    %19 = tpu.matmul %16, %17, %cst_16 {dimension_numbers = #tpu.dot_dimension_numbers<[1], [0], [0], [1], [0, 0, 1, 1], [], []>} : vector<8x128xf32>, vector<128x128xf32>, vector<8x128xf32> -> vector<8x128xf32>
    %20 = vector.broadcast %18 : vector<1x128xf32> to vector<8x128xf32>
    %21 = arith.addf %19, %20 : vector<8x128xf32>
    %cst_17 = arith.constant 0.000000e+00 : f32
    %22 = vector.broadcast %cst_17 : f32 to vector<8x128xf32>
    %23 = arith.cmpf oge, %21, %22 : vector<8x128xf32>
    %cst_18 = arith.constant 0.000000e+00 : f32
    %24 = vector.broadcast %cst_18 : f32 to vector<8x128xf32>
    %25 = arith.subf %24, %21 : vector<8x128xf32>
    %26 = math.exp %25 : vector<8x128xf32>
    %cst_19 = arith.constant 1.000000e+00 : f32
    %27 = vector.broadcast %cst_19 : f32 to vector<8x128xf32>
    %28 = arith.addf %27, %26 : vector<8x128xf32>
    %cst_20 = arith.constant 1.000000e+00 : f32
    %29 = vector.broadcast %cst_20 : f32 to vector<8x128xf32>
    %30 = arith.divf %29, %28 : vector<8x128xf32>
    %31 = math.exp %21 : vector<8x128xf32>
    %32 = math.exp %21 : vector<8x128xf32>
    %cst_21 = arith.constant 1.000000e+00 : f32
    %33 = vector.broadcast %cst_21 : f32 to vector<8x128xf32>
    %34 = arith.addf %33, %32 : vector<8x128xf32>
    %35 = arith.divf %31, %34 : vector<8x128xf32>
    %36 = arith.select %23, %30, %35 : vector<8x128xi1>, vector<8x128xf32>
    %c0_22 = arith.constant 0 : index
    %c0_23 = arith.constant 0 : index
    %37 = vector.load %arg8[%c0_22, %c0_23] : memref<8x128xf32, #tpu.memory_space<vmem>>, vector<8x128xf32>
    tpu.vector_store %arg8[%c0_22, %c0_23], %36 {strides = array<i32>} : memref<8x128xf32, #tpu.memory_space<vmem>>, vector<8x128xf32>,
    return
  }
  func.func @transform_0(%arg0: i32) -> (i32, i32) {
    %c0_i32 = arith.constant 0 : i32
    %c0_i32_0 = arith.constant 0 : i32
    return %arg0, %c0_i32 : i32, i32
  }
  func.func @transform_1(%arg0: i32) -> (i32, i32) {
    %c0_i32 = arith.constant 0 : i32
    %c0_i32_0 = arith.constant 0 : i32
    %c0_i32_1 = arith.constant 0 : i32
    return %c0_i32, %c0_i32_0 : i32, i32
  }
  func.func @transform_2(%arg0: i32) -> (i32, i32) {
    %c0_i32 = arith.constant 0 : i32
    %c0_i32_0 = arith.constant 0 : i32
    %c0_i32_1 = arith.constant 0 : i32
    return %c0_i32, %c0_i32_0 : i32, i32
  }
  func.func @transform_3(%arg0: i32) -> (i32, i32) {
    %c0_i32 = arith.constant 0 : i32
    %c0_i32_0 = arith.constant 0 : i32
    %c0_i32_1 = arith.constant 0 : i32
    return %c0_i32, %c0_i32_0 : i32, i32
  }
  func.func @transform_4(%arg0: i32) -> (i32, i32) {
    %c0_i32 = arith.constant 0 : i32
    %c0_i32_0 = arith.constant 0 : i32
    %c0_i32_1 = arith.constant 0 : i32
    return %c0_i32, %c0_i32_0 : i32, i32
  }
  func.func @transform_5(%arg0: i32) -> (i32, i32) {
    %c0_i32 = arith.constant 0 : i32
    %c0_i32_0 = arith.constant 0 : i32
    %c0_i32_1 = arith.constant 0 : i32
    return %c0_i32, %c0_i32_0 : i32, i32
  }
  func.func @transform_6(%arg0: i32) -> (i32, i32) {
    %c0_i32 = arith.constant 0 : i32
    %c0_i32_0 = arith.constant 0 : i32
    %c0_i32_1 = arith.constant 0 : i32
    return %c0_i32, %c0_i32_0 : i32, i32
  }
  func.func @transform_7(%arg0: i32) -> (i32, i32) {
    %c0_i32 = arith.constant 0 : i32
    %c0_i32_0 = arith.constant 0 : i32
    return %arg0, %c0_i32 : i32, i32
  }
}

</mosaic_0001>

<bundles_post_ra>
// kernel: tpu_custom_call.1
= control target key start
LH: loop header
LB: loop body
LE: loop exit
PB: predicated region body
PF: predicated region fallthrough
CT: control target
= control target key end

     0   :  { %12 = vsyncpa [#allocation3], 0  ;;  %s920_s0 = inlined_call_operand.hbm [shape: f32[8,128], index: 0, kind: input, shape index: {}]   ;;  %s921_s1 = inlined_call_operand.hbm [shape: f32[128,128], index: 1, kind: input, shape index: {}]   ;;  %s922_s2 = inlined_call_operand.vmem [shape: f32[1,128], index: 2, kind: input, shape index: {}]   ;;  %s923_s3 = inlined_call_operand.hbm [shape: f32[128,128], index: 3, kind: input, shape index: {}]   ;;  %s924_s4 = inlined_call_operand.vmem [shape: f32[1,128], index: 4, kind: input, shape index: {}]   ;;  %s925_s5 = inlined_call_operand.hbm [shape: f32[128,128], index: 5, kind: input, shape index: {}]   ;;  %s926_s6 = inlined_call_operand.vmem [shape: f32[1,128], index: 6, kind: input, shape index: {}]   ;;  %s927_s7 = inlined_call_operand.hbm [shape: f32[8,128], index: 7, kind: output, shape index: {}]  }
   0x1   :  { %13 = vsyncpa [#allocation6], 0 }
   0x2   :  { %14 = vsyncpa [#allocation9], 0 }
   0x3   :  { %15 = vsyncpa [#allocation4], 0  ;;  %s762_s24 = smov [#allocation5]   ;;  %s644_s28 = scalar_lea.hbm %s921_s1, 2048 }
   0x4   :  { %s31_s25 = sshll.u32 %s762_s24, 4  ;;  %p645_p0 = scmp.ne.s32.totalorder %s921_s1, %s644_s28  ;;  %s32_s25 = int_to_ptr.vmem [resolvable:$true] %s31_s25 }
   0x5   :  { %p648_p1 = scmp.lt.u32.totalorder %s644_s28, %s921_s1 }
   0x7   :  { %p650_p2 = pnand %p648_p1, %p645_p0 }
   0x9   :  { %653 = shalt.err (!%p650_p2)
}
   0xa   :  { %s654_s10 = scalar_lea.vmem %s32_s25, 2048  ;;  %p659_p4 = scmp.lt.s32.totalorder %s32_s25, %s32_s25 }
   0xb   :  { %p655_p3 = scmp.ne.s32.totalorder %s32_s25, %s654_s10  ;;  %p660_p5 = scmp.lt.s32.totalorder %s654_s10, %s654_s10 }
   0xd   :  { %p661_p6 = por %p660_p5, %p659_p4 }
   0xf   :  { %p662_p7 = pnand %p661_p6, %p655_p3 }
  0x11   :  { %665 = shalt.err (!%p662_p7)
}
  0x12   :  { %s763_s11 = smov 128   ;;  %s764_s12 = smov 8  }
  0x13   :  { %37 = dma.hbm_to_vmem [thread:$0]  %s921_s1, 2048, %s32_s25, [#allocation6], %s763_s11, %s763_s11, %s764_s12  }
  0x14   :  { %s765_s15 = smov [#allocation2]   ;;  %s766_s17 = smov [#allocation7]  }
  0x15   :  { %s22_s16 = sshll.u32 %s765_s15, 4  ;;  %s45_s18 = sshll.u32 %s766_s17, 4  ;;  %s23_s16 = int_to_ptr.vmem [resolvable:$true] %s22_s16  ;;  %s46_s18 = int_to_ptr.vmem [resolvable:$true] %s45_s18 }
  0x16   :  { %s666_s21 = scalar_lea.hbm %s920_s0, 128 }
  0x17   :  { %p667_p8 = scmp.ne.s32.totalorder %s920_s0, %s666_s21  ;;  %p670_p9 = scmp.lt.u32.totalorder %s666_s21, %s920_s0 }
  0x19   :  { %p672_p10 = pnand %p670_p9, %p667_p8 }
  0x1b   :  { %675 = shalt.err (!%p672_p10)
}
  0x1c   :  { %s676_s1 = scalar_lea.vmem %s23_s16, 128  ;;  %p681_p12 = scmp.lt.s32.totalorder %s23_s16, %s23_s16 }
  0x1d   :  { %p677_p11 = scmp.ne.s32.totalorder %s23_s16, %s676_s1  ;;  %p682_p13 = scmp.lt.s32.totalorder %s676_s1, %s676_s1 }
  0x1f   :  { %p683_p0 = por %p682_p13, %p681_p12 }
  0x21   :  { %p684_p1 = pnand %p683_p0, %p677_p11 }
  0x23   :  { %687 = shalt.err (!%p684_p1)
}
  0x24   :  { %25 = dma.hbm_to_vmem [thread:$0]  %s920_s0, 128, %s23_s16, [#allocation3]  }
  0x25   :  { %s688_s30 = scalar_lea.hbm %s923_s3, 2048 }
  0x26   :  { %p689_p2 = scmp.ne.s32.totalorder %s923_s3, %s688_s30  ;;  %p692_p3 = scmp.lt.u32.totalorder %s688_s30, %s923_s3 }
  0x28   :  { %p694_p4 = pnand %p692_p3, %p689_p2 }
  0x2a   :  { %697 = shalt.err (!%p694_p4)
}
  0x2b   :  { %s698_s14 = scalar_lea.vmem %s46_s18, 2048  ;;  %p703_p6 = scmp.lt.s32.totalorder %s46_s18, %s46_s18 }
  0x2c   :  { %p699_p5 = scmp.ne.s32.totalorder %s46_s18, %s698_s14  ;;  %p704_p7 = scmp.lt.s32.totalorder %s698_s14, %s698_s14 }
  0x2e   :  { %p705_p8 = por %p704_p7, %p703_p6 }
  0x30   :  { %p706_p9 = pnand %p705_p8, %p699_p5 }
  0x32   :  { %709 = shalt.err (!%p706_p9)
}
  0x33   :  { %51 = dma.hbm_to_vmem [thread:$0]  %s923_s3, 2048, %s46_s18, [#allocation6], %s763_s11, %s763_s11, %s764_s12  }
  0x34   :  { %s767_s16 = smov [#allocation8]   ;;  %s710_s21 = scalar_lea.hbm %s925_s5, 2048 }
  0x35   :  { %s59_s17 = sshll.u32 %s767_s16, 4  ;;  %p711_p10 = scmp.ne.s32.totalorder %s925_s5, %s710_s21  ;;  %s60_s17 = int_to_ptr.vmem [resolvable:$true] %s59_s17 }
  0x36   :  { %p714_p11 = scmp.lt.u32.totalorder %s710_s21, %s925_s5 }
  0x38   :  { %p716_p12 = pnand %p714_p11, %p711_p10 }
  0x3a   :  { %719 = shalt.err (!%p716_p12)
}
  0x3b   :  { %s720_s1 = scalar_lea.vmem %s60_s17, 2048  ;;  %p725_p0 = scmp.lt.s32.totalorder %s60_s17, %s60_s17 }
  0x3c   :  { %p721_p13 = scmp.ne.s32.totalorder %s60_s17, %s720_s1  ;;  %p726_p1 = scmp.lt.s32.totalorder %s720_s1, %s720_s1 }
  0x3e   :  { %p727_p2 = por %p726_p1, %p725_p0 }
  0x40   :  { %p728_p3 = pnand %p727_p2, %p721_p13 }
  0x42   :  { %731 = shalt.err (!%p728_p3)
}
  0x43   :  { %65 = dma.hbm_to_vmem [thread:$0]  %s925_s5, 2048, %s60_s17, [#allocation9], %s763_s11, %s763_s11, %s764_s12  }
  0x44   :  { %754 = dma.done.wait [#allocation3], 128  }
  0x45   :  { %755 = vsyncadd [#allocation3], 4294967168 }
  0x46   :  { %756 = dma.done.wait [#allocation6], 4096  }
  0x47   :  { %757 = vsyncadd [#allocation6], 4294963200 }
  0x48   :  { %758 = dma.done.wait [#allocation9], 2048  }
  0x49   :  { %759 = vsyncadd [#allocation9], 4294965248  ;;  %v768_v0 = vmov 0.0|0.0   ;;  %vm769_vm0 = vmmov 0   ;;  %v770_v1 = vmov 0.0   ;;  %v81_v2 = vld [vmem:[#allocation5] sm:$0xff] }
  0x4a   :  { %554 = vmatprep.subr.bf16.mxu0 %v768_v0  ;;  %481 = vmatprep.mubr.msk.f32.mxu0 %vm769_vm0, %v770_v1  ;;  %v82_v3 = vld [vmem:[#allocation5 + $0x8] sm:$0xff]  ;;  %v83_v4 = vld [vmem:[#allocation5 + $0x10] sm:$0xff]  ;;  %v84_v6 = vld [vmem:[#allocation5 + $0x18] sm:$0xff] }
  0x4b   :  { %578 = vmatprep.subr.bf16.mxu1 %v768_v0  ;;  %516 = vmatprep.mubr.msk.f32.mxu1 %vm769_vm0, %v770_v1  ;;  %v555_v5 = vpack.c.bf16 %v82_v3, %v81_v2  ;;  %v558_v7 = vpack.c.bf16 %v84_v6, %v83_v4  ;;  %v85_v8 = vld [vmem:[#allocation5 + $0x20] sm:$0xff]  ;;  %v86_v9 = vld [vmem:[#allocation5 + $0x28] sm:$0xff]  ;;  %v178_v12 = vld [vmem:[#allocation7 + $0x10] sm:$0xff] }
  0x4c   :  { %v176_v10 = vld [vmem:[#allocation7] sm:$0xff]  ;;  %v177_v11 = vld [vmem:[#allocation7 + $0x8] sm:$0xff]  ;;  %v179_v13 = vld [vmem:[#allocation7 + $0x18] sm:$0xff]  ;;  %v561_v14 = vpack.c.bf16 %v86_v9, %v85_v8 }
  0x4d   :  { %556 = vmatpush3.bf16.msra.mxu0 %v555_v5  ;;  %v579_v15 = vpack.c.bf16 %v177_v11, %v176_v10  ;;  %v87_v16 = vld [vmem:[#allocation5 + $0x30] sm:$0xff]  ;;  %v88_v17 = vld [vmem:[#allocation5 + $0x38] sm:$0xff]  ;;  %v582_v18 = vpack.c.bf16 %v179_v13, %v178_v12  ;;  %v180_v19 = vld [vmem:[#allocation7 + $0x20] sm:$0xff] }
  0x4e   :  { %557 = vmatprep.subr.bf16.mxu0 %v768_v0  ;;  %v181_v20 = vld [vmem:[#allocation7 + $0x28] sm:$0xff]  ;;  %v564_v21 = vpack.c.bf16 %v88_v17, %v87_v16  ;;  %v89_v22 = vld [vmem:[#allocation5 + $0x40] sm:$0xff]  ;;  %v182_v25 = vld [vmem:[#allocation7 + $0x30] sm:$0xff] }
  0x4f   :  { %580 = vmatpush3.bf16.msra.mxu1 %v579_v15  ;;  %v90_v23 = vld [vmem:[#allocation5 + $0x48] sm:$0xff]  ;;  %v585_v24 = vpack.c.bf16 %v181_v20, %v180_v19  ;;  %v183_v26 = vld [vmem:[#allocation7 + $0x38] sm:$0xff]  ;;  %v91_v28 = vld [vmem:[#allocation5 + $0x50] sm:$0xff] }
  0x50   :  { %581 = vmatprep.subr.bf16.mxu1 %v768_v0  ;;  %v567_v27 = vpack.c.bf16 %v90_v23, %v89_v22  ;;  %v92_v29 = vld [vmem:[#allocation5 + $0x58] sm:$0xff]  ;;  %v588_v30 = vpack.c.bf16 %v183_v26, %v182_v25  ;;  %v184_v31 = vld [vmem:[#allocation7 + $0x40] sm:$0xff]  ;;  %v185_v32 = vld [vmem:[#allocation7 + $0x48] sm:$0xff] }
  0x51   :  { %559 = vmatpush3.bf16.msra.mxu0 %v558_v7  ;;  %v570_v33 = vpack.c.bf16 %v92_v29, %v91_v28  ;;  %v93_v34 = vld [vmem:[#allocation5 + $0x60] sm:$0xff]  ;;  %v94_v35 = vld [vmem:[#allocation5 + $0x68] sm:$0xff]  ;;  %v591_v36 = vpack.c.bf16 %v185_v32, %v184_v31  ;;  %v186_v37 = vld [vmem:[#allocation7 + $0x50] sm:$0xff] }
  0x52   :  { %560 = vmatprep.subr.bf16.mxu0 %v768_v0  ;;  %v187_v38 = vld [vmem:[#allocation7 + $0x58] sm:$0xff]  ;;  %v573_v39 = vpack.c.bf16 %v94_v35, %v93_v34  ;;  %v95_v40 = vld [vmem:[#allocation5 + $0x70] sm:$0xff]  ;;  %v188_v45 = vld [vmem:[#allocation7 + $0x60] sm:$0xff] }
  0x53   :  { %583 = vmatpush3.bf16.msra.mxu1 %v582_v18  ;;  %v96_v41 = vld [vmem:[#allocation5 + $0x78] sm:$0xff]  ;;  %v594_v42 = vpack.c.bf16 %v187_v38, %v186_v37  ;;  %v189_v46 = vld [vmem:[#allocation7 + $0x68] sm:$0xff]  ;;  %v190_v48 = vld [vmem:[#allocation7 + $0x70] sm:$0xff] }
  0x54   :  { %584 = vmatprep.subr.bf16.mxu1 %v768_v0  ;;  %v576_v43 = vpack.c.bf16 %v96_v41, %v95_v40  ;;  %v80_v44 = vld [vmem:[#allocation2] sm:$0xff]  ;;  %v597_v47 = vpack.c.bf16 %v189_v46, %v188_v45  ;;  %v271_v51 = vld [vmem:[#allocation8] sm:$0xff]  ;;  %v272_v52 = vld [vmem:[#allocation8 + $0x8] sm:$0xff] }
  0x55   :  { %562 = vmatpush3.bf16.msra.mxu0 %v561_v14  ;;  %v191_v49 = vld [vmem:[#allocation7 + $0x78] sm:$0xff]  ;;  %v273_v53 = vld [vmem:[#allocation8 + $0x10] sm:$0xff]  ;;  %v603_v54 = vpack.c.bf16 %v272_v52, %v271_v51  ;;  %v275_v57 = vld [vmem:[#allocation8 + $0x20] sm:$0xff] }
  0x56   :  { %563 = vmatprep.subr.bf16.mxu0 %v768_v0  ;;  %v600_v50 = vpack.c.bf16 %v191_v49, %v190_v48  ;;  %v274_v55 = vld [vmem:[#allocation8 + $0x18] sm:$0xff]  ;;  %v276_v58 = vld [vmem:[#allocation8 + $0x28] sm:$0xff]  ;;  %v277_v60 = vld [vmem:[#allocation8 + $0x30] sm:$0xff] }
  0x57   :  { %586 = vmatpush3.bf16.msra.mxu1 %v585_v24  ;;  %v606_v56 = vpack.c.bf16 %v274_v55, %v273_v53  ;;  %v609_v59 = vpack.c.bf16 %v276_v58, %v275_v57  ;;  %v278_v61 = vld [vmem:[#allocation8 + $0x38] sm:$0xff]  ;;  %v279_v63 = vld [vmem:[#allocation8 + $0x40] sm:$0xff]  ;;  %v281_v3 = vld [vmem:[#allocation8 + $0x50] sm:$0xff] }
  0x58   :  { %587 = vmatprep.subr.bf16.mxu1 %v768_v0  ;;  %v612_v62 = vpack.c.bf16 %v278_v61, %v277_v60  ;;  %v282_v4 = vld [vmem:[#allocation8 + $0x58] sm:$0xff]  ;;  %v283_v12 = vld [vmem:[#allocation8 + $0x60] sm:$0xff]  ;;  %v284_v13 = vld [vmem:[#allocation8 + $0x68] sm:$0xff] }
  0x59   :  { %565 = vmatpush3.bf16.msra.mxu0 %v564_v21  ;;  %v618_v5 = vpack.c.bf16 %v282_v4, %v281_v3  ;;  %v395_v6 = vld [vmem:[%s922_s2] ss:$0 sm:$0xff]  ;;  %v621_v14 = vpack.c.bf16 %v284_v13, %v283_v12  ;;  %v285_v15 = vld [vmem:[#allocation8 + $0x70] sm:$0xff] }
  0x5a   :  { %566 = vmatprep.subr.bf16.mxu0 %v768_v0  ;;  %v286_v16 = vld [vmem:[#allocation8 + $0x78] sm:$0xff] }
  0x5b   :  { %589 = vmatpush3.bf16.msra.mxu1 %v588_v30  ;;  %v624_v17 = vpack.c.bf16 %v286_v16, %v285_v15  ;;  %v396_v18 = vld [vmem:[%s924_s4] ss:$0 sm:$0xff]  ;;  %s771_s4 = smov [#allocation10]  }
  0x5c   :  { %590 = vmatprep.subr.bf16.mxu1 %v768_v0  ;;  %v397_v24 = vld [vmem:[%s926_s6] ss:$0 sm:$0xff]  ;;  %s384_s28 = sshll.u32 %s771_s4, 4  ;;  %s385_s28 = int_to_ptr.vmem [resolvable:$true] %s384_s28 }
  0x5d   :  { %568 = vmatpush3.bf16.msra.mxu0 %v567_v27  ;;  %s732_s6 = scalar_lea.vmem %s385_s28, 128  ;;  %p737_p5 = scmp.lt.s32.totalorder %s385_s28, %s385_s28 }
  0x5e   :  { %569 = vmatprep.subr.bf16.mxu0 %v768_v0  ;;  %p733_p4 = scmp.ne.s32.totalorder %s385_s28, %s732_s6  ;;  %p738_p6 = scmp.lt.s32.totalorder %s732_s6, %s732_s6 }
  0x5f   :  { %592 = vmatpush3.bf16.msra.mxu1 %v591_v36 }
  0x60   :  { %593 = vmatprep.subr.bf16.mxu1 %v768_v0  ;;  %p739_p7 = por %p738_p6, %p737_p5 }
  0x61   :  { %571 = vmatpush3.bf16.msra.mxu0 %v570_v33 }
  0x62   :  { %572 = vmatprep.subr.bf16.mxu0 %v768_v0  ;;  %p740_p8 = pnand %p739_p7, %p733_p4 }
  0x63   :  { %595 = vmatpush3.bf16.msra.mxu1 %v594_v42 }
  0x64   :  { %596 = vmatprep.subr.bf16.mxu1 %v768_v0 }
  0x65   :  { %574 = vmatpush3.bf16.msra.mxu0 %v573_v39 }
  0x66   :  { %575 = vmatprep.subr.bf16.mxu0 %v768_v0 }
  0x67   :  { %598 = vmatpush3.bf16.msra.mxu1 %v597_v47 }
  0x68   :  { %599 = vmatprep.subr.bf16.mxu1 %v768_v0 }
  0x69   :  { %577 = vmatpush3.bf16.msra.mxu0 %v576_v43 }
  0x6a   :  { %602 = vmatprep.subr.bf16.mxu0 %v768_v0 }
  0x6b   :  { %601 = vmatpush3.bf16.msra.mxu1 %v600_v50 }
  0x6c   :  { %482 = vmatmul.mubr.f32.vlgmr.msra.gmra.mrb[0].mxu0 %v80_v44 }
  0x6d   :  { %551 = vmatprep.mubr.msk.f32.mxu0 %vm769_vm0, %v770_v1  ;;  %604 = vmatpush3.bf16.msra.mxu0 %v603_v54  ;;  %v280_v1 = vld [vmem:[#allocation8 + $0x48] sm:$0xff] }
  0x6e   :  { %605 = vmatprep.subr.bf16.mxu0 %v768_v0  ;;  %v615_v2 = vpack.c.bf16 %v280_v1, %v279_v63 }
  0x71   :  { %607 = vmatpush3.bf16.msra.mxu0 %v606_v56 }
  0x72   :  { %608 = vmatprep.subr.bf16.mxu0 %v768_v0 }
  0x75   :  { %610 = vmatpush3.bf16.msra.mxu0 %v609_v59 }
  0x76   :  { %611 = vmatprep.subr.bf16.mxu0 %v768_v0 }
  0x79   :  { %613 = vmatpush3.bf16.msra.mxu0 %v612_v62 }
  0x7a   :  { %614 = vmatprep.subr.bf16.mxu0 %v768_v0 }
  0x7d   :  { %616 = vmatpush3.bf16.msra.mxu0 %v615_v2 }
  0x7e   :  { %617 = vmatprep.subr.bf16.mxu0 %v768_v0 }
  0x81   :  { %619 = vmatpush3.bf16.msra.mxu0 %v618_v5 }
  0x82   :  { %620 = vmatprep.subr.bf16.mxu0 %v768_v0 }
  0x85   :  { %622 = vmatpush3.bf16.msra.mxu0 %v621_v14 }
  0x86   :  { %623 = vmatprep.subr.bf16.mxu0 %v768_v0 }
  0x89   :  { %625 = vmatpush3.bf16.msra.mxu0 %v624_v17 }
 0x13f   :  { %v170_v7 = vpop.f32.mrb[0].mxu0 }
 0x140   :  { %v171_v8 = vadd.f32 %v395_v6, %v170_v7  ;;  %v483_v9 = vpop.f32.mrb[1].mxu0 }
 0x142   :  { %v174_v10 = vmul.f32 0.2, %v171_v8 }
 0x144   :  { %v175_v11 = vmax.f32 %v171_v8, %v174_v10 }
 0x146   :  { %517 = vmatmul.mubr.f32.vlgmr.msra.gmra.mrb[0].mxu1 %v175_v11 }
 0x219   :  { %v265_v19 = vpop.f32.mrb[0].mxu1 }
 0x21a   :  { %v266_v20 = vadd.f32 %v396_v18, %v265_v19  ;;  %v518_v21 = vpop.f32.mrb[1].mxu1 }
 0x21c   :  { %v269_v22 = vmul.f32 0.2, %v266_v20 }
 0x21e   :  { %v270_v23 = vmax.f32 %v266_v20, %v269_v22 }
 0x220   :  { %552 = vmatmul.mubr.f32.vlgmr.msra.gmra.mrb[2].mxu0 %v270_v23 }
 0x2f3   :  { %v360_v25 = vpop.f32.mrb[2].mxu0 }
 0x2f4   :  { %v361_v0 = vadd.f32 %v397_v24, %v360_v25  ;;  %v553_v26 = vpop.f32.mrb[3].mxu0 }
 0x2f6   :  { %v365_v27 = vsub.f32 0.0, %v361_v0  ;;  %v371_v28 = vmul.f32 1.442695, %v361_v0  ;;  %vm364_vm1 = vcmp.ge.f32.partialorder %v361_v0, 0.0 }
 0x2f8   :  { %v366_v29 = vmul.f32 1.442695, %v365_v27  ;;  %636 = vpow2.f32 %v371_v28 }
 0x2fa   :  { %638 = vpow2.f32 %v366_v29 }
 0x302   :  { %v637_v30 = vpop.eup %636 }
 0x303   :  { %v373_v31 = vadd.f32 1.0, %v637_v30 }
 0x304   :  { %v639_v32 = vpop.eup %638 }
 0x305   :  { %v368_v33 = vadd.f32 1.0, %v639_v32  ;;  %640 = vrcp.f32 %v373_v31 }
 0x307   :  { %642 = vrcp.f32 %v368_v33 }
 0x30f   :  { %v641_v34 = vpop.eup %640 }
 0x310   :  { %v375_v35 = vmul.f32 %v641_v34, %v637_v30 }
 0x311   :  { %v643_v36 = vpop.eup %642 }
 0x312   :  { %v376_v37 = vsel %vm364_vm1, %v643_v36, %v375_v35 }
 0x313   :  { %377 = vst [vmem:[#allocation10] sm:$0xff] %v376_v37 }
 0x314   :  { %743 = shalt.err (!%p740_p8)
}
 0x315   :  { %s744_s8 = scalar_lea.hbm %s927_s7, 128 }
 0x316   :  { %p745_p9 = scmp.ne.s32.totalorder %s927_s7, %s744_s8  ;;  %p748_p10 = scmp.lt.u32.totalorder %s744_s8, %s927_s7 }
 0x318   :  { %p750_p11 = pnand %p748_p10, %p745_p9 }
 0x31a   :  { %753 = shalt.err (!%p750_p11)
}
 0x31b   :  { %387 = dma.vmem_to_hbm [thread:$0]  %s385_s28, 128, %s927_s7, [#allocation4]  }
 0x31c   :  { %760 = dma.done.wait [#allocation4], 128  }
 0x31d   :  { %761 = vsyncadd [#allocation4], 4294967168 }
 0x31e   :  { %391 = vsyncpa [#allocation3], 1 }
 0x31f   :  { %392 = vsyncpa [#allocation6], 1 }
 0x320   :  { %393 = vsyncpa [#allocation9], 1 }
 0x321   :  { %394 = vsyncpa [#allocation4], 1 }

</bundles_post_ra>
